<compile_context>
chip_gen: v7x
topology: tpu7x:2x2x1
jax: 0.10.0
libtpu: 0.0.40
codegen_flags: <defaults>
</compile_context>

<pallas_src>
import functools

import jax
import jax.numpy as jnp
from jax.experimental import pallas as pl
from jax.experimental.pallas import tpu as pltpu


def _mha_kernel(xc_ref, p_ref, o_ref, *, n_heads, query_size,
                counts_size, covariates_size):
    # Packed activations: columns [0:counts) = X, [counts:counts+cov) = C.
    xc = xc_ref[...]                                            # (B, counts+cov)
    x = xc[:, :counts_size]                                     # (B, counts)
    c = xc[:, counts_size:counts_size + covariates_size]        # (B, cov)

    # Packed parameter slab rows: Wq | Wk | Wv | bq | bk | bv (8-row padded).
    r1 = counts_size
    r2 = r1 + covariates_size
    r3 = r2 + covariates_size
    wq = p_ref[0:r1, :]                 # (counts, H*Qd), softmax scale pre-folded
    wk = p_ref[r1:r2, :]                # (cov,    H*Qd)
    wv = p_ref[r2:r3, :]                # (cov,    H*Qd)
    bq = p_ref[r3:r3 + 1, :]            # (1, H*Qd), scale pre-folded
    bk = p_ref[r3 + 1:r3 + 2, :]        # (1, H*Qd)
    bv = p_ref[r3 + 2:r3 + 3, :]        # (1, H*Qd)

    # Fused lane-dense projections across all heads: (B, H*Qd) matmuls.
    q_all = jnp.dot(x, wq, preferred_element_type=jnp.float32) + bq
    k_all = jnp.dot(c, wk, preferred_element_type=jnp.float32) + bk
    v_all = jnp.dot(c, wv, preferred_element_type=jnp.float32) + bv

    # One up-front transpose for all heads instead of one implicit per-head
    # transpose inside a dot_general.
    k_t = k_all.T                                               # (H*Qd, B)

    heads = []
    for h in range(n_heads):
        lo = h * query_size
        q_h = q_all[:, lo:lo + query_size]                      # (B, Qd)
        kt_h = k_t[lo:lo + query_size, :]                       # (Qd, B), 8-aligned rows
        v_h = v_all[:, lo:lo + query_size]                      # (B, Qd)

        # scores = (q / sqrt(Qd)) @ k^T — the scale is already folded into wq/bq.
        s = jnp.dot(q_h, kt_h, preferred_element_type=jnp.float32)   # (B, B)

        # softmax over dim=1 (last axis of the 2-D score matrix), numerically stable.
        s = s - jnp.max(s, axis=-1, keepdims=True)
        p = jnp.exp(s)
        # approx=False kept on purpose: the approx EUP reciprocal's relative error
        # can consume most of the 1e-4 accuracy budget (review correctness note).
        inv = pl.reciprocal(jnp.sum(p, axis=-1, keepdims=True), approx=False)

        heads.append(jnp.dot(p * inv, v_h, preferred_element_type=jnp.float32))

    # Single unmasked lane-dense store: (B, H*Qd) == torch.cat(heads, dim=-1).
    o_ref[...] = jnp.concatenate(heads, axis=-1)


def multi_head_attention(X, C, Wq, bq, Wk, bk, Wv, bv):
    """Wq/Wk/Wv: (H, in_features, Qd); bq/bk/bv: (H, 1, Qd).  Returns (B, H*Qd)."""
    H, counts_size, Qd = Wq.shape
    covariates_size = Wk.shape[1]
    B = X.shape[0]
    HQ = H * Qd
    scale = 1.0 / (Qd ** 0.5)
    f32 = jnp.float32

    # One-time parameter re-layout OUTSIDE the hot kernel (in a real model this is
    # precomputed once per weight update, not per forward call):
    #   (H, in, Qd) -> (in, H*Qd), head h occupies columns [h*Qd, (h+1)*Qd);
    #   the 1/sqrt(Qd) softmax scale is folded into the Q weights/bias.
    Wq_all = (jnp.transpose(Wq, (1, 0, 2)).reshape(counts_size, HQ) * scale).astype(f32)
    Wk_all = jnp.transpose(Wk, (1, 0, 2)).reshape(covariates_size, HQ).astype(f32)
    Wv_all = jnp.transpose(Wv, (1, 0, 2)).reshape(covariates_size, HQ).astype(f32)
    bq_all = (bq.reshape(1, HQ) * scale).astype(f32)
    bk_all = bk.reshape(1, HQ).astype(f32)
    bv_all = bv.reshape(1, HQ).astype(f32)

    # Pack all parameters into ONE slab so the kernel sees a single input DMA:
    #   rows [0, counts)               : Wq * scale
    #   rows [counts, counts+cov)      : Wk
    #   rows [counts+cov, counts+2cov) : Wv
    #   next three rows                : bq*scale, bk, bv
    # padded to a multiple of 8 sublanes (67 -> 72 rows at the default sizes).
    rows = counts_size + 2 * covariates_size + 3
    rows_pad = -(-rows // 8) * 8
    b0 = counts_size + 2 * covariates_size
    params = jnp.zeros((rows_pad, HQ), f32)
    params = params.at[:counts_size].set(Wq_all)
    params = params.at[counts_size:counts_size + covariates_size].set(Wk_all)
    params = params.at[counts_size + covariates_size:b0].set(Wv_all)
    params = params.at[b0:b0 + 1].set(bq_all)
    params = params.at[b0 + 1:b0 + 2].set(bk_all)
    params = params.at[b0 + 2:b0 + 3].set(bv_all)

    # Pack the two activations into one slab as well (one DMA instead of two).
    xc = jnp.concatenate([X.astype(f32), C.astype(f32)], axis=-1)   # (B, counts+cov)

    vmem = pl.BlockSpec(memory_space=pltpu.MemorySpace.VMEM)

    # Advisory cost so XLA can overlap this sub-µs custom call with neighbouring HLO.
    flops = 2 * (B * counts_size * HQ + 2 * B * covariates_size * HQ
                 + 2 * H * B * B * Qd)
    cost = pl.CostEstimate(
        flops=flops,
        transcendentals=H * B * B,
        bytes_accessed=4 * (xc.size + params.size + B * HQ),
    )

    # TODO(synk): if this module is invoked for many independent (X, C) instances per
    # step, add a leading grid axis (index_maps selecting per-instance xc, constant
    # index_map for params) and mark it "parallel" so v7x shards it across both
    # TensorCores; a single instance is dispatch-bound either way.
    # TODO(synk): for B in the thousands the H*B^2 f32 score intermediates would blow
    # VMEM (64 MiB physical on v7x) — switch to a gridded flash-style online softmax.
    return pl.pallas_call(
        functools.partial(_mha_kernel, n_heads=H, query_size=Qd,
                          counts_size=counts_size,
                          covariates_size=covariates_size),
        out_shape=jax.ShapeDtypeStruct((B, HQ), f32),
        in_specs=[vmem, vmem],
        out_specs=vmem,
        cost_estimate=cost,
    )(xc, params)


if __name__ == "__main__":
    B, counts_size, covariates_size, query_size, n_heads = 8, 32, 16, 32, 4

    key = jax.random.PRNGKey(0)
    keys = jax.random.split(key, 8)

    X = jax.random.normal(keys[0], (B, counts_size), jnp.float32)
    C = jax.random.normal(keys[1], (B, covariates_size), jnp.float32)

    # Deterministic PyTorch-Linear-style init (uniform in +-1/sqrt(fan_in)).
    bq_bound = 1.0 / (counts_size ** 0.5)
    bkv_bound = 1.0 / (covariates_size ** 0.5)
    Wq = jax.random.uniform(keys[2], (n_heads, counts_size, query_size), jnp.float32,
                            -bq_bound, bq_bound)
    bq = jax.random.uniform(keys[3], (n_heads, 1, query_size), jnp.float32,
                            -bq_bound, bq_bound)
    Wk = jax.random.uniform(keys[4], (n_heads, covariates_size, query_size), jnp.float32,
                            -bkv_bound, bkv_bound)
    bk = jax.random.uniform(keys[5], (n_heads, 1, query_size), jnp.float32,
                            -bkv_bound, bkv_bound)
    Wv = jax.random.uniform(keys[6], (n_heads, covariates_size, query_size), jnp.float32,
                            -bkv_bound, bkv_bound)
    bv = jax.random.uniform(keys[7], (n_heads, 1, query_size), jnp.float32,
                            -bkv_bound, bkv_bound)

    out = multi_head_attention(X, C, Wq, bq, Wk, bk, Wv, bv)
    out = jax.block_until_ready(out)

    # Pure-JAX reference mirroring the PyTorch forward exactly.
    def reference(X, C):
        heads = []
        for h in range(n_heads):
            q = X @ Wq[h] + bq[h]
            k = C @ Wk[h] + bk[h]
            v = C @ Wv[h] + bv[h]
            a = q @ k.T / (query_size ** 0.5)
            a = jax.nn.softmax(a, axis=1) @ v
            heads.append(a)
        return jnp.concatenate(heads, axis=-1)

    expected = reference(X, C)
    assert out.shape == (B, n_heads * query_size), out.shape
    assert jnp.allclose(out, expected, rtol=1e-4, atol=1e-4), \
        float(jnp.max(jnp.abs(out - expected)))
    print("KERNEL_OK")
</pallas_src>

<mosaic_0001>
module attributes {stable_mosaic.version = 11 : i64} {
  func.func @_mha_kernel(%arg0: memref<8x48xf32, #tpu.memory_space<vmem>>, %arg1: memref<72x128xf32, #tpu.memory_space<vmem>>, %arg2: memref<8x128xf32, #tpu.memory_space<vmem>>) attributes {dimension_semantics = [], scalar_prefetch = 0 : i64, scratch_operands = 0 : i64, tpu.core_type = #tpu.core_type<tc>} {
    %c0 = arith.constant 0 : index
    %c0_0 = arith.constant 0 : index
    %0 = vector.load %arg0[%c0, %c0_0] : memref<8x48xf32, #tpu.memory_space<vmem>>, vector<8x48xf32>
    %1 = vector.extract_strided_slice %0 {offsets = [0, 0], sizes = [8, 32], strides = [1, 1]} : vector<8x48xf32> to vector<8x32xf32>
    %2 = vector.extract_strided_slice %0 {offsets = [0, 32], sizes = [8, 16], strides = [1, 1]} : vector<8x48xf32> to vector<8x16xf32>
    %c0_1 = arith.constant 0 : index
    %c0_2 = arith.constant 0 : index
    %3 = vector.load %arg1[%c0_1, %c0_2] : memref<72x128xf32, #tpu.memory_space<vmem>>, vector<32x128xf32>
    %c32 = arith.constant 32 : index
    %c0_3 = arith.constant 0 : index
    %4 = vector.load %arg1[%c32, %c0_3] : memref<72x128xf32, #tpu.memory_space<vmem>>, vector<16x128xf32>
    %c48 = arith.constant 48 : index
    %c0_4 = arith.constant 0 : index
    %5 = vector.load %arg1[%c48, %c0_4] : memref<72x128xf32, #tpu.memory_space<vmem>>, vector<16x128xf32>
    %c64 = arith.constant 64 : index
    %c0_5 = arith.constant 0 : index
    %6 = vector.load %arg1[%c64, %c0_5] : memref<72x128xf32, #tpu.memory_space<vmem>>, vector<1x128xf32>
    %c65 = arith.constant 65 : index
    %c0_6 = arith.constant 0 : index
    %7 = vector.load %arg1[%c65, %c0_6] : memref<72x128xf32, #tpu.memory_space<vmem>>, vector<1x128xf32>
    %c66 = arith.constant 66 : index
    %c0_7 = arith.constant 0 : index
    %8 = vector.load %arg1[%c66, %c0_7] : memref<72x128xf32, #tpu.memory_space<vmem>>, vector<1x128xf32>
    %cst = arith.constant dense<0.000000e+00> : vector<8x128xf32>
    %9 = tpu.matmul %1, %3, %cst {dimension_numbers = #tpu.dot_dimension_numbers<[1], [0], [0], [1], [0, 0, 1, 1], [], []>} : vector<8x32xf32>, vector<32x128xf32>, vector<8x128xf32> -> vector<8x128xf32>
    %10 = vector.broadcast %6 : vector<1x128xf32> to vector<8x128xf32>
    %11 = arith.addf %9, %10 : vector<8x128xf32>
    %cst_8 = arith.constant dense<0.000000e+00> : vector<8x128xf32>
    %12 = tpu.matmul %2, %4, %cst_8 {dimension_numbers = #tpu.dot_dimension_numbers<[1], [0], [0], [1], [0, 0, 1, 1], [], []>} : vector<8x16xf32>, vector<16x128xf32>, vector<8x128xf32> -> vector<8x128xf32>
    %13 = vector.broadcast %7 : vector<1x128xf32> to vector<8x128xf32>
    %14 = arith.addf %12, %13 : vector<8x128xf32>
    %cst_9 = arith.constant dense<0.000000e+00> : vector<8x128xf32>
    %15 = tpu.matmul %2, %5, %cst_9 {dimension_numbers = #tpu.dot_dimension_numbers<[1], [0], [0], [1], [0, 0, 1, 1], [], []>} : vector<8x16xf32>, vector<16x128xf32>, vector<8x128xf32> -> vector<8x128xf32>
    %16 = vector.broadcast %8 : vector<1x128xf32> to vector<8x128xf32>
    %17 = arith.addf %15, %16 : vector<8x128xf32>
    %18 = tpu.transpose %14, [1, 0] : vector<8x128xf32> -> vector<128x8xf32>
    %19 = vector.extract_strided_slice %11 {offsets = [0, 0], sizes = [8, 32], strides = [1, 1]} : vector<8x128xf32> to vector<8x32xf32>
    %20 = vector.extract_strided_slice %18 {offsets = [0, 0], sizes = [32, 8], strides = [1, 1]} : vector<128x8xf32> to vector<32x8xf32>
    %21 = vector.extract_strided_slice %17 {offsets = [0, 0], sizes = [8, 32], strides = [1, 1]} : vector<8x128xf32> to vector<8x32xf32>
    %cst_10 = arith.constant dense<0.000000e+00> : vector<8x8xf32>
    %22 = tpu.matmul %19, %20, %cst_10 {dimension_numbers = #tpu.dot_dimension_numbers<[1], [0], [0], [1], [0, 0, 1, 1], [], []>} : vector<8x32xf32>, vector<32x8xf32>, vector<8x8xf32> -> vector<8x8xf32>
    %cst_11 = arith.constant dense<0xFF800000> : vector<8xf32>
    %23 = vector.multi_reduction <maximumf>, %22, %cst_11 [1] : vector<8x8xf32> to vector<8xf32>
    %24 = vector.shape_cast %23 : vector<8xf32> to vector<8x1xf32>
    %25 = vector.broadcast %24 : vector<8x1xf32> to vector<8x8xf32>
    %26 = arith.subf %22, %25 : vector<8x8xf32>
    %27 = math.exp %26 : vector<8x8xf32>
    %cst_12 = arith.constant dense<0.000000e+00> : vector<8xf32>
    %28 = vector.multi_reduction <add>, %27, %cst_12 [1] : vector<8x8xf32> to vector<8xf32>
    %29 = vector.shape_cast %28 : vector<8xf32> to vector<8x1xf32>
    %30 = tpu.reciprocal %29 : vector<8x1xf32> -> vector<8x1xf32>
    %31 = vector.broadcast %30 : vector<8x1xf32> to vector<8x8xf32>
    %32 = arith.mulf %27, %31 : vector<8x8xf32>
    %cst_13 = arith.constant dense<0.000000e+00> : vector<8x32xf32>
    %33 = tpu.matmul %32, %21, %cst_13 {dimension_numbers = #tpu.dot_dimension_numbers<[1], [0], [0], [1], [0, 0, 1, 1], [], []>} : vector<8x8xf32>, vector<8x32xf32>, vector<8x32xf32> -> vector<8x32xf32>
    %34 = vector.extract_strided_slice %11 {offsets = [0, 32], sizes = [8, 32], strides = [1, 1]} : vector<8x128xf32> to vector<8x32xf32>
    %35 = vector.extract_strided_slice %18 {offsets = [32, 0], sizes = [32, 8], strides = [1, 1]} : vector<128x8xf32> to vector<32x8xf32>
    %36 = vector.extract_strided_slice %17 {offsets = [0, 32], sizes = [8, 32], strides = [1, 1]} : vector<8x128xf32> to vector<8x32xf32>
    %cst_14 = arith.constant dense<0.000000e+00> : vector<8x8xf32>
    %37 = tpu.matmul %34, %35, %cst_14 {dimension_numbers = #tpu.dot_dimension_numbers<[1], [0], [0], [1], [0, 0, 1, 1], [], []>} : vector<8x32xf32>, vector<32x8xf32>, vector<8x8xf32> -> vector<8x8xf32>
    %cst_15 = arith.constant dense<0xFF800000> : vector<8xf32>
    %38 = vector.multi_reduction <maximumf>, %37, %cst_15 [1] : vector<8x8xf32> to vector<8xf32>
    %39 = vector.shape_cast %38 : vector<8xf32> to vector<8x1xf32>
    %40 = vector.broadcast %39 : vector<8x1xf32> to vector<8x8xf32>
    %41 = arith.subf %37, %40 : vector<8x8xf32>
    %42 = math.exp %41 : vector<8x8xf32>
    %cst_16 = arith.constant dense<0.000000e+00> : vector<8xf32>
    %43 = vector.multi_reduction <add>, %42, %cst_16 [1] : vector<8x8xf32> to vector<8xf32>
    %44 = vector.shape_cast %43 : vector<8xf32> to vector<8x1xf32>
    %45 = tpu.reciprocal %44 : vector<8x1xf32> -> vector<8x1xf32>
    %46 = vector.broadcast %45 : vector<8x1xf32> to vector<8x8xf32>
    %47 = arith.mulf %42, %46 : vector<8x8xf32>
    %cst_17 = arith.constant dense<0.000000e+00> : vector<8x32xf32>
    %48 = tpu.matmul %47, %36, %cst_17 {dimension_numbers = #tpu.dot_dimension_numbers<[1], [0], [0], [1], [0, 0, 1, 1], [], []>} : vector<8x8xf32>, vector<8x32xf32>, vector<8x32xf32> -> vector<8x32xf32>
    %49 = vector.extract_strided_slice %11 {offsets = [0, 64], sizes = [8, 32], strides = [1, 1]} : vector<8x128xf32> to vector<8x32xf32>
    %50 = vector.extract_strided_slice %18 {offsets = [64, 0], sizes = [32, 8], strides = [1, 1]} : vector<128x8xf32> to vector<32x8xf32>
    %51 = vector.extract_strided_slice %17 {offsets = [0, 64], sizes = [8, 32], strides = [1, 1]} : vector<8x128xf32> to vector<8x32xf32>
    %cst_18 = arith.constant dense<0.000000e+00> : vector<8x8xf32>
    %52 = tpu.matmul %49, %50, %cst_18 {dimension_numbers = #tpu.dot_dimension_numbers<[1], [0], [0], [1], [0, 0, 1, 1], [], []>} : vector<8x32xf32>, vector<32x8xf32>, vector<8x8xf32> -> vector<8x8xf32>
    %cst_19 = arith.constant dense<0xFF800000> : vector<8xf32>
    %53 = vector.multi_reduction <maximumf>, %52, %cst_19 [1] : vector<8x8xf32> to vector<8xf32>
    %54 = vector.shape_cast %53 : vector<8xf32> to vector<8x1xf32>
    %55 = vector.broadcast %54 : vector<8x1xf32> to vector<8x8xf32>
    %56 = arith.subf %52, %55 : vector<8x8xf32>
    %57 = math.exp %56 : vector<8x8xf32>
    %cst_20 = arith.constant dense<0.000000e+00> : vector<8xf32>
    %58 = vector.multi_reduction <add>, %57, %cst_20 [1] : vector<8x8xf32> to vector<8xf32>
    %59 = vector.shape_cast %58 : vector<8xf32> to vector<8x1xf32>
    %60 = tpu.reciprocal %59 : vector<8x1xf32> -> vector<8x1xf32>
    %61 = vector.broadcast %60 : vector<8x1xf32> to vector<8x8xf32>
    %62 = arith.mulf %57, %61 : vector<8x8xf32>
    %cst_21 = arith.constant dense<0.000000e+00> : vector<8x32xf32>
    %63 = tpu.matmul %62, %51, %cst_21 {dimension_numbers = #tpu.dot_dimension_numbers<[1], [0], [0], [1], [0, 0, 1, 1], [], []>} : vector<8x8xf32>, vector<8x32xf32>, vector<8x32xf32> -> vector<8x32xf32>
    %64 = vector.extract_strided_slice %11 {offsets = [0, 96], sizes = [8, 32], strides = [1, 1]} : vector<8x128xf32> to vector<8x32xf32>
    %65 = vector.extract_strided_slice %18 {offsets = [96, 0], sizes = [32, 8], strides = [1, 1]} : vector<128x8xf32> to vector<32x8xf32>
    %66 = vector.extract_strided_slice %17 {offsets = [0, 96], sizes = [8, 32], strides = [1, 1]} : vector<8x128xf32> to vector<8x32xf32>
    %cst_22 = arith.constant dense<0.000000e+00> : vector<8x8xf32>
    %67 = tpu.matmul %64, %65, %cst_22 {dimension_numbers = #tpu.dot_dimension_numbers<[1], [0], [0], [1], [0, 0, 1, 1], [], []>} : vector<8x32xf32>, vector<32x8xf32>, vector<8x8xf32> -> vector<8x8xf32>
    %cst_23 = arith.constant dense<0xFF800000> : vector<8xf32>
    %68 = vector.multi_reduction <maximumf>, %67, %cst_23 [1] : vector<8x8xf32> to vector<8xf32>
    %69 = vector.shape_cast %68 : vector<8xf32> to vector<8x1xf32>
    %70 = vector.broadcast %69 : vector<8x1xf32> to vector<8x8xf32>
    %71 = arith.subf %67, %70 : vector<8x8xf32>
    %72 = math.exp %71 : vector<8x8xf32>
    %cst_24 = arith.constant dense<0.000000e+00> : vector<8xf32>
    %73 = vector.multi_reduction <add>, %72, %cst_24 [1] : vector<8x8xf32> to vector<8xf32>
    %74 = vector.shape_cast %73 : vector<8xf32> to vector<8x1xf32>
    %75 = tpu.reciprocal %74 : vector<8x1xf32> -> vector<8x1xf32>
    %76 = vector.broadcast %75 : vector<8x1xf32> to vector<8x8xf32>
    %77 = arith.mulf %72, %76 : vector<8x8xf32>
    %cst_25 = arith.constant dense<0.000000e+00> : vector<8x32xf32>
    %78 = tpu.matmul %77, %66, %cst_25 {dimension_numbers = #tpu.dot_dimension_numbers<[1], [0], [0], [1], [0, 0, 1, 1], [], []>} : vector<8x8xf32>, vector<8x32xf32>, vector<8x32xf32> -> vector<8x32xf32>
    %79 = tpu.concatenate %33, %48, %63, %78 in 1 : vector<8x32xf32>, vector<8x32xf32>, vector<8x32xf32>, vector<8x32xf32> -> vector<8x128xf32>
    %c0_26 = arith.constant 0 : index
    %c0_27 = arith.constant 0 : index
    %80 = vector.load %arg2[%c0_26, %c0_27] : memref<8x128xf32, #tpu.memory_space<vmem>>, vector<8x128xf32>
    tpu.vector_store %arg2[%c0_26, %c0_27], %79 {strides = array<i32>} : memref<8x128xf32, #tpu.memory_space<vmem>>, vector<8x128xf32>,
    return
  }
}

</mosaic_0001>

<bundles_post_ra>
// kernel: tpu_custom_call.1
= control target key start
LH: loop header
LB: loop body
LE: loop exit
PB: predicated region body
PF: predicated region fallthrough
CT: control target
= control target key end

     0   :  { %7 = vsyncpa [#allocation3], 0  ;;  %s1333_s0 = inlined_call_operand.hbm [shape: f32[8,48], index: 0, kind: input, shape index: {}]   ;;  %s1334_s1 = inlined_call_operand.hbm [shape: f32[72,128], index: 1, kind: input, shape index: {}]   ;;  %s1335_s2 = inlined_call_operand.hbm [shape: f32[8,128], index: 2, kind: output, shape index: {}]  }
   0x1   :  { %8 = vsyncpa [#allocation6], 0 }
   0x2   :  { %9 = vsyncpa [#allocation4], 0  ;;  %s1193_s9 = smov [#allocation2]   ;;  %s1194_s11 = smov [#allocation5]  }
   0x3   :  { %s16_s10 = sshll.u32 %s1193_s9, 4  ;;  %s25_s12 = sshll.u32 %s1194_s11, 4  ;;  %s17_s10 = int_to_ptr.vmem [resolvable:$true] %s16_s10  ;;  %s1219_s12 = int_to_ptr.vmem [resolvable:$true] %s25_s12 }
   0x4   :  { %s1121_s15 = scalar_lea.hbm %s1333_s0, 128 }
   0x5   :  { %p1122_p0 = scmp.ne.s32.totalorder %s1333_s0, %s1121_s15  ;;  %p1125_p1 = scmp.lt.u32.totalorder %s1121_s15, %s1333_s0 }
   0x7   :  { %p1127_p2 = pnand %p1125_p1, %p1122_p0 }
   0x9   :  { %1130 = shalt.err (!%p1127_p2)
}
   0xa   :  { %s1131_s20 = scalar_lea.vmem %s17_s10, 128  ;;  %p1136_p4 = scmp.lt.s32.totalorder %s17_s10, %s17_s10 }
   0xb   :  { %p1132_p3 = scmp.ne.s32.totalorder %s17_s10, %s1131_s20  ;;  %p1137_p5 = scmp.lt.s32.totalorder %s1131_s20, %s1131_s20 }
   0xd   :  { %p1138_p6 = por %p1137_p5, %p1136_p4 }
   0xf   :  { %p1139_p7 = pnand %p1138_p6, %p1132_p3 }
  0x11   :  { %1142 = shalt.err (!%p1139_p7)
}
  0x12   :  { %19 = dma.hbm_to_vmem [thread:$0]  %s1333_s0, 128, %s17_s10, [#allocation3]  }
  0x13   :  { %s1143_s25 = scalar_lea.hbm %s1334_s1, 1152 }
  0x14   :  { %p1144_p8 = scmp.ne.s32.totalorder %s1334_s1, %s1143_s25  ;;  %p1147_p9 = scmp.lt.u32.totalorder %s1143_s25, %s1334_s1 }
  0x16   :  { %p1149_p10 = pnand %p1147_p9, %p1144_p8 }
  0x18   :  { %1152 = shalt.err (!%p1149_p10)
}
  0x19   :  { %s1153_s30 = scalar_lea.vmem %s1219_s12, 1152  ;;  %p1158_p12 = scmp.lt.s32.totalorder %s1219_s12, %s1219_s12 }
  0x1a   :  { %p1154_p11 = scmp.ne.s32.totalorder %s1219_s12, %s1153_s30  ;;  %p1159_p13 = scmp.lt.s32.totalorder %s1153_s30, %s1153_s30 }
  0x1c   :  { %p1160_p0 = por %p1159_p13, %p1158_p12 }
  0x1e   :  { %p1161_p1 = pnand %p1160_p0, %p1154_p11 }
  0x20   :  { %1164 = shalt.err (!%p1161_p1)
}
  0x21   :  { %s1195_s0 = smov 128   ;;  %s1196_s3 = smov 8  }
  0x22   :  { %31 = dma.hbm_to_vmem [thread:$0]  %s1334_s1, 1152, %s1219_s12, [#allocation6], %s1195_s0, %s1195_s0, %s1196_s3  }
  0x23   :  { %1187 = dma.done.wait [#allocation3], 128  }
  0x24   :  { %1188 = vsyncadd [#allocation3], 4294967168 }
  0x25   :  { %1189 = dma.done.wait [#allocation6], 1152  }
  0x26   :  { %1190 = vsyncadd [#allocation6], 4294966144  ;;  %v1197_v0 = vmov 0.0|0.0   ;;  %vm1198_vm0 = vmmov 0   ;;  %v1199_v1 = vmov 0.0   ;;  %v38_v2 = vld [vmem:[#allocation2] sm:$0xff] }
  0x27   :  { %1082 = vmatprep.subr.bf16.mxu0 %v1197_v0  ;;  %1025 = vmatprep.mubr.msk.f32.mxu0 %vm1198_vm0, %v1199_v1  ;;  %v39_v3 = vld [vmem:[#allocation5] sm:$0xff]  ;;  %v40_v4 = vld [vmem:[#allocation5 + $0x8] sm:$0xff]  ;;  %s1200_s6 = smov 96   ;;  %v41_v6 = vld [vmem:[#allocation5 + $0x10] sm:$0xff]  ;;  %vm54_vm1 = vcmask 261120   ;;  %vm134_vm2 = vcmask 130048  }
  0x28   :  { %1088 = vmatprep.subr.bf16.mxu1 %v1197_v0  ;;  %1032 = vmatprep.mubr.msk.f32.mxu1 %vm1198_vm0, %v1199_v1  ;;  %v1083_v5 = vpack.c.bf16 %v40_v4, %v39_v3  ;;  %v42_v7 = vld [vmem:[#allocation5 + $0x18] sm:$0xff]  ;;  %v43_v8 = vld [vmem:[#allocation5 + $0x20] sm:$0xff]  ;;  %v44_v9 = vld [vmem:[#allocation5 + $0x28] sm:$0xff]  ;;  %s1201_s1 = smov 64   ;;  %s1202_s7 = smov 32   ;;  %vm357_vm3 = vcmask 64512  }
  0x29   :  { %132 = vrot.lane.b32.xlu0 %v38_v2, %s1200_s6  ;;  %v1086_v10 = vpack.c.bf16 %v42_v7, %v41_v6  ;;  %v1089_v11 = vpack.c.bf16 %v44_v9, %v43_v8  ;;  %v45_v12 = vld [vmem:[#allocation5 + $0x30] sm:$0xff]  ;;  %v46_v13 = vld [vmem:[#allocation5 + $0x38] sm:$0xff]  ;;  %v972_v16 = vld [vmem:[#allocation5 + $0x40] ss:$0 sm:$0xff]  ;;  %vm951_vm4 = vcmask 523264   ;;  %s1203_s8 = smov [#allocation7]  }
  0x2a   :  { %1084 = vmatpush3.bf16.msra.mxu0 %v1083_v5  ;;  %v1092_v14 = vpack.c.bf16 %v46_v13, %v45_v12  ;;  %v974_v20 = vld [vmem:[#allocation5 + $0x41] ss:$0 sm:$0xff]  ;;  %v976_v24 = vld [vmem:[#allocation5 + $0x42] ss:$0 sm:$0xff]  ;;  %s962_s9 = sshll.u32 %s1203_s8, 4  ;;  %vm953_vm5 = vcmask 785408   ;;  %s963_s9 = int_to_ptr.vmem [resolvable:$true] %s962_s9 }
  0x2b   :  { %1085 = vmatprep.subr.bf16.mxu0 %v1197_v0  ;;  %1090 = vmatpush3.bf16.msra.mxu1 %v1089_v11  ;;  %s1165_s10 = scalar_lea.vmem %s963_s9, 128  ;;  %p1170_p3 = scmp.lt.s32.totalorder %s963_s9, %s963_s9 }
  0x2c   :  { %1091 = vmatprep.subr.bf16.mxu1 %v1197_v0  ;;  %p1166_p2 = scmp.ne.s32.totalorder %s963_s9, %s1165_s10  ;;  %p1171_p4 = scmp.lt.s32.totalorder %s1165_s10, %s1165_s10 }
  0x2e   :  { %1087 = vmatpush3.bf16.msra.mxu0 %v1086_v10  ;;  %p1172_p5 = por %p1171_p4, %p1170_p3 }
  0x2f   :  { %1042 = vmatprep.subr.mxu0 %v1199_v1 }
  0x30   :  { %p1173_p6 = pnand %p1172_p5, %p1166_p2 }
  0x31   :  { %1026 = vmatmul.mubr.msk.f32.vlgmr.msra.gmra.mrb[0].mxu0 %vm54_vm1, %v38_v2 }
  0x32   :  { %1044 = vmatprep.mubr.msk.f32.mxu0 %vm1198_vm0, %v1199_v1 }
  0x9b   :  { %v133_v15 = vpop.permute.xlu0 %132 }
  0x9c   :  { %1033 = vmatmul.mubr.msk.f32.vlgmr.msra.gmra.mrb[0].mxu1 %vm134_vm2, %v133_v15 }
  0x9d   :  { %1093 = vmatpush3.bf16.msra.mxu1 %v1092_v14  ;;  %1039 = vmatprep.mubr.msk.f32.mxu1 %vm1198_vm0, %v1199_v1 }
  0x9e   :  { %1047 = vmatprep.subr.mxu1 %v1199_v1 }
  0xa0   :  { %1040 = vmatmul.mubr.msk.f32.vlgmr.msra.gmra.mrb[2].mxu1 %vm134_vm2, %v133_v15 }
  0xa1   :  { %1049 = vmatprep.mubr.msk.f32.mxu1 %vm1198_vm0, %v1199_v1 }
 0x104   :  { %v124_v17 = vpop.f32.mrb[0].mxu0 }
 0x105   :  { %v125_v18 = vadd.f32 %v972_v16, %v124_v17  ;;  %v1027_v19 = vpop.f32.mrb[1].mxu0 }
 0x107   :  { %442 = vrot.lane.b32.xlu1 %v125_v18, %s1200_s6 }
 0x16f   :  { %v203_v21 = vpop.f32.mrb[0].mxu1 }
 0x170   :  { %v204_v22 = vadd.f32 %v974_v20, %v203_v21  ;;  %v1034_v23 = vpop.f32.mrb[1].mxu1 }
 0x172   :  { %444 = vrot.lane.b32.xlu0 %v204_v22, %s1200_s6  ;;  %1043 = vmatpush3.xpose.msk.msra.mxu0 %vm54_vm1, %v204_v22 }
 0x173   :  { %610 = vrot.lane.b32.xlu1 %v204_v22, %s1201_s1  ;;  %v277_v25 = vpop.f32.mrb[2].mxu1  ;;  %1052 = vmatprep.subr.mxu0 %v1199_v1 }
 0x174   :  { %v1269_v26 = vadd.f32 %v976_v24, %v277_v25  ;;  %v1041_v27 = vpop.f32.mrb[3].mxu1 }
 0x175   :  { %1045 = vmatmul.mubr.msk.f32.vlgmr.msra.gmra.mrb[2].mxu0 %vm54_vm1, %v125_v18 }
 0x176   :  { %1048 = vmatpush3.msra.mxu1 %v1269_v26  ;;  %608 = vrot.lane.b32.xlu0 %v125_v18, %s1201_s1 }
 0x177   :  { %775 = vrot.lane.b32.xlu1 %v204_v22, %s1202_s7  ;;  %1054 = vmatprep.mubr.msk.f32.mxu0 %vm1198_vm0, %v1199_v1 }
 0x178   :  { %1057 = vmatprep.subr.mxu1 %v1199_v1 }
 0x179   :  { %v443_v28 = vpop.permute.xlu1 %442 }
 0x17a   :  { %773 = vrot.lane.b32.xlu0 %v125_v18, %s1202_s7 }
 0x1e4   :  { %v445_v29 = vpop.permute.xlu0 %444 }
 0x1e5   :  { %1053 = vmatpush3.xpose.msk.msra.mxu0 %vm54_vm1, %v445_v29  ;;  %v611_v30 = vpop.permute.xlu1 %610 }
 0x1e6   :  { %1062 = vmatprep.subr.mxu0 %v1199_v1 }
 0x1e8   :  { %1055 = vmatmul.mubr.msk.f32.vlgmr.msra.gmra.mrb[4].mxu0 %vm54_vm1, %v443_v28  ;;  %v609_v31 = vpop.permute.xlu0 %608 }
 0x1e9   :  { %1063 = vmatpush3.xpose.msk.msra.mxu0 %vm54_vm1, %v611_v30  ;;  %1064 = vmatprep.mubr.msk.f32.mxu0 %vm1198_vm0, %v1199_v1  ;;  %v776_v32 = vpop.permute.xlu1 %775 }
 0x1ea   :  { %1072 = vmatprep.subr.mxu0 %v1199_v1 }
 0x1ec   :  { %1065 = vmatmul.mubr.msk.f32.vlgmr.msra.gmra.mrb[6].mxu0 %vm54_vm1, %v609_v31  ;;  %v774_v33 = vpop.permute.xlu0 %773 }
 0x1ed   :  { %1073 = vmatpush3.xpose.msk.msra.mxu0 %vm54_vm1, %v776_v32  ;;  %1074 = vmatprep.mubr.msk.f32.mxu0 %vm1198_vm0, %v1199_v1 }
 0x1f0   :  { %1075 = vmatmul.mubr.msk.f32.vlgmr.msra.gmra.mrb[8].mxu0 %vm54_vm1, %v774_v33 }
 0x248   :  { %v353_v34 = vpop.f32.mrb[2].mxu0 }
 0x249   :  { %v1046_v35 = vpop.f32.mrb[3].mxu0  ;;  %v358_v36 = vsel %vm357_vm3, %v353_v34, -inf }
 0x24a   :  { %359 = vmax.xlane.f32.xlu1 %v358_v36 }
 0x2bb   :  { %v516_v37 = vpop.f32.mrb[4].mxu0 }
 0x2bc   :  { %v1056_v38 = vpop.f32.mrb[5].mxu0  ;;  %v520_v39 = vsel %vm357_vm3, %v516_v37, -inf }
 0x2bd   :  { %521 = vmax.xlane.f32.xlu0 %v520_v39 }
 0x2bf   :  { %v682_v40 = vpop.f32.mrb[6].mxu0 }
 0x2c0   :  { %v1066_v41 = vpop.f32.mrb[7].mxu0  ;;  %v686_v42 = vsel %vm357_vm3, %v682_v40, -inf }
 0x2c1   :  { %687 = vmax.xlane.f32.xlu0 %v686_v42 }
 0x2c3   :  { %v847_v43 = vpop.f32.mrb[8].mxu0 }
 0x2c4   :  { %v1076_v44 = vpop.f32.mrb[9].mxu0  ;;  %v851_v45 = vsel %vm357_vm3, %v847_v43, -inf }
 0x2c5   :  { %852 = vmax.xlane.f32.xlu1 %v851_v45 }
 0x2d7   :  { %v360_v46 = vpop.xlane.xlu1 %359 }
 0x2d8   :  { %v361_v47 = vsub.f32 %v353_v34, %v360_v46 }
 0x2da   :  { %v362_v48 = vmul.f32 1.442695, %v361_v47 }
 0x2dc   :  { %1105 = vpow2.f32 %v362_v48 }
 0x2e6   :  { %v1106_v49 = vpop.eup %1105 }
 0x2e7   :  { %v364_v50 = vsel %vm357_vm3, %v1106_v49, 0.0 }
 0x2e8   :  { %365 = vadd.xlane.f32.xlu0 %v364_v50 }
 0x34a   :  { %v522_v51 = vpop.xlane.xlu0 %521 }
 0x34b   :  { %v523_v52 = vsub.f32 %v516_v37, %v522_v51 }
 0x34d   :  { %v524_v53 = vmul.f32 1.442695, %v523_v52 }
 0x34e   :  { %v688_v54 = vpop.xlane.xlu0 %687 }
 0x34f   :  { %1107 = vpow2.f32 %v524_v53  ;;  %v689_v55 = vsub.f32 %v682_v40, %v688_v54 }
 0x351   :  { %v690_v56 = vmul.f32 1.442695, %v689_v55 }
 0x352   :  { %v853_v62 = vpop.xlane.xlu1 %852 }
 0x353   :  { %1109 = vpow2.f32 %v690_v56  ;;  %v854_v63 = vsub.f32 %v847_v43, %v853_v62 }
 0x355   :  { %v855_v0 = vmul.f32 1.442695, %v854_v63 }
 0x359   :  { %v1108_v57 = vpop.eup %1107 }
 0x35a   :  { %v526_v58 = vsel %vm357_vm3, %v1108_v57, 0.0 }
 0x35b   :  { %527 = vadd.xlane.f32.xlu1 %v526_v58 }
 0x35d   :  { %v1110_v59 = vpop.eup %1109 }
 0x35e   :  { %v692_v60 = vsel %vm357_vm3, %v1110_v59, 0.0 }
 0x35f   :  { %693 = vadd.xlane.f32.xlu0 %v692_v60 }
 0x36c   :  { %697 = vrot.lane.b32.xlu1 %v1269_v26, %s1201_s1 }
 0x375   :  { %532 = vrot.lane.b32.xlu0 %v1269_v26, %s1200_s6  ;;  %v366_v61 = vpop.xlane.xlu0 %365 }
 0x376   :  { %1111 = vrcp.f32 %v366_v61 }
 0x377   :  { %1113 = vpow2.f32 %v855_v0 }
 0x380   :  { %v1112_v2 = vpop.eup %1111 }
 0x381   :  { %v368_v3 = vmul.f32 %v1112_v2, %v1106_v49  ;;  %v1114_v4 = vpop.eup %1113 }
 0x382   :  { %v857_v5 = vsel %vm357_vm3, %v1114_v4, 0.0 }
 0x383   :  { %1050 = vmatmul.mubr.msk.f32.vlgmr.msra.gmra.mrb[4].mxu1 %vm357_vm3, %v368_v3 }
 0x384   :  { %1059 = vmatprep.mubr.msk.f32.mxu1 %vm1198_vm0, %v1199_v1 }
 0x390   :  { %858 = vadd.xlane.f32.xlu1 %v857_v5 }
 0x3a1   :  { %862 = vrot.lane.b32.xlu1 %v1269_v26, %s1202_s7 }
 0x3e8   :  { %v528_v6 = vpop.xlane.xlu1 %527 }
 0x3e9   :  { %1115 = vrcp.f32 %v528_v6 }
 0x3ec   :  { %v694_v7 = vpop.xlane.xlu0 %693  ;;  %v698_v11 = vpop.permute.xlu1 %697 }
 0x3ed   :  { %1117 = vrcp.f32 %v694_v7 }
 0x3f0   :  { %v533_v8 = vpop.permute.xlu0 %532 }
 0x3f1   :  { %1058 = vmatpush3.msra.mxu1 %v533_v8 }
 0x3f2   :  { %1067 = vmatprep.subr.mxu1 %v1199_v1 }
 0x3f3   :  { %v1116_v9 = vpop.eup %1115 }
 0x3f4   :  { %v530_v10 = vmul.f32 %v1116_v9, %v1108_v57 }
 0x3f6   :  { %1060 = vmatmul.mubr.msk.f32.vlgmr.msra.gmra.mrb[6].mxu1 %vm357_vm3, %v530_v10 }
 0x3f7   :  { %v1118_v12 = vpop.eup %1117  ;;  %1068 = vmatpush3.msra.mxu1 %v698_v11  ;;  %1069 = vmatprep.mubr.msk.f32.mxu1 %vm1198_vm0, %v1199_v1 }
 0x3f8   :  { %v696_v13 = vmul.f32 %v1118_v12, %v1110_v59  ;;  %1077 = vmatprep.subr.mxu1 %v1199_v1 }
 0x3fa   :  { %1070 = vmatmul.mubr.msk.f32.vlgmr.msra.gmra.mrb[8].mxu1 %vm357_vm3, %v696_v13 }
 0x3fb   :  { %1079 = vmatprep.mubr.msk.f32.mxu1 %vm1198_vm0, %v1199_v1 }
 0x41d   :  { %v859_v14 = vpop.xlane.xlu1 %858 }
 0x41e   :  { %1119 = vrcp.f32 %v859_v14 }
 0x421   :  { %v863_v15 = vpop.permute.xlu1 %862 }
 0x422   :  { %1078 = vmatpush3.msra.mxu1 %v863_v15 }
 0x428   :  { %v1120_v16 = vpop.eup %1119 }
 0x429   :  { %v861_v17 = vmul.f32 %v1120_v16, %v1114_v4 }
 0x42b   :  { %1080 = vmatmul.mubr.msk.f32.vlgmr.msra.gmra.mrb[10].mxu1 %vm357_vm3, %v861_v17 }
 0x456   :  { %v438_v18 = vpop.f32.mrb[4].mxu1 }
 0x457   :  { %v1051_v19 = vpop.f32.mrb[5].mxu1 }
 0x4c9   :  { %v604_v20 = vpop.f32.mrb[6].mxu1 }
 0x4ca   :  { %939 = vrot.lane.b32.xlu0 %v604_v20, %s1202_s7  ;;  %v1061_v21 = vpop.f32.mrb[7].mxu1 }
 0x4cd   :  { %v769_v22 = vpop.f32.mrb[8].mxu1 }
 0x4ce   :  { %943 = vrot.lane.b32.xlu1 %v769_v22, %s1201_s1  ;;  %v1071_v23 = vpop.f32.mrb[9].mxu1 }
 0x4fe   :  { %v934_v24 = vpop.f32.mrb[10].mxu1 }
 0x4ff   :  { %947 = vrot.lane.b32.xlu0 %v934_v24, %s1200_s6  ;;  %v1081_v1 = vpop.f32.mrb[11].mxu1 }
 0x53c   :  { %v940_v25 = vpop.permute.xlu0 %939 }
 0x53d   :  { %v950_v27 = vsel %vm54_vm1, %v438_v18, %v940_v25 }
 0x540   :  { %v944_v26 = vpop.permute.xlu1 %943 }
 0x541   :  { %v952_v28 = vsel %vm951_vm4, %v950_v27, %v944_v26 }
 0x571   :  { %v948_v29 = vpop.permute.xlu0 %947 }
 0x572   :  { %v954_v30 = vsel %vm953_vm5, %v952_v28, %v948_v29 }
 0x573   :  { %955 = vst [vmem:[#allocation7] sm:$0xff] %v954_v30 }
 0x574   :  { %1176 = shalt.err (!%p1173_p6)
}
 0x575   :  { %s1177_s13 = scalar_lea.hbm %s1335_s2, 128 }
 0x576   :  { %p1178_p7 = scmp.ne.s32.totalorder %s1335_s2, %s1177_s13  ;;  %p1181_p8 = scmp.lt.u32.totalorder %s1177_s13, %s1335_s2 }
 0x578   :  { %p1183_p9 = pnand %p1181_p8, %p1178_p7 }
 0x57a   :  { %1186 = shalt.err (!%p1183_p9)
}
 0x57b   :  { %965 = dma.vmem_to_hbm [thread:$0]  %s963_s9, 128, %s1335_s2, [#allocation4]  }
 0x57c   :  { %1191 = dma.done.wait [#allocation4], 128  }
 0x57d   :  { %1192 = vsyncadd [#allocation4], 4294967168 }
 0x57e   :  { %969 = vsyncpa [#allocation3], 1 }
 0x57f   :  { %970 = vsyncpa [#allocation6], 1 }
 0x580   :  { %971 = vsyncpa [#allocation4], 1 }

</bundles_post_ra>
